<compile_context>
chip_gen: v7x
topology: tpu7x:2x2x1
jax: 0.10.0
libtpu: 0.0.40
codegen_flags: <defaults>
</compile_context>

<pallas_src>
import functools

import jax
import jax.numpy as jnp
from jax import lax
from jax.experimental import pallas as pl
from jax.experimental.pallas import tpu as pltpu


def _make_kernel(n: int, ts: int, tl: int):
    """n = true (unpadded) sample count; ts / tl = sublane / lane tile sizes."""

    def kernel(y_col_ref, y_row_ref, p_col_ref, p_row_ref, out_ref,
               strict_acc, tie_acc):
        i = pl.program_id(0)          # row-tile  (axis `a` of the pair matrix)
        j = pl.program_id(1)          # col-tile  (axis `b`)

        @pl.when((i == 0) & (j == 0))
        def _init():
            strict_acc[...] = jnp.zeros_like(strict_acc)
            tie_acc[...] = jnp.zeros_like(tie_acc)

        row_start = i * ts
        col_start = j * tl

        # Tile classification w.r.t. the strict upper triangle (a < b).
        tile_all_upper = (row_start + ts) <= col_start        # every a <  b
        tile_all_lower = row_start >= (col_start + tl)        # every a >= b

        def accumulate(need_mask):
            # diff[a, b] = v[a] - v[b]; padded y entries are NaN so any pair
            # touching padding fails every comparison below -> contributes 0.
            gt_diff = y_col_ref[...] - y_row_ref[...]          # (ts, tl)
            pr_diff = p_col_ref[...] - p_row_ref[...]          # (ts, tl)

            strict = ((gt_diff > 0.0) & (pr_diff > 0.0)) | \
                     ((gt_diff < 0.0) & (pr_diff < 0.0))
            tie = gt_diff == 0.0

            if need_mask:     # tile straddles the diagonal: keep a < b only
                a_ids = row_start + lax.broadcasted_iota(jnp.int32, (ts, tl), 0)
                b_ids = col_start + lax.broadcasted_iota(jnp.int32, (ts, tl), 1)
                upper = a_ids < b_ids
                strict = strict & upper
                tie = tie & upper

            strict_acc[...] += jnp.sum(strict.astype(jnp.int32), keepdims=True)
            tie_acc[...] += jnp.sum(tie.astype(jnp.int32), keepdims=True)

        @pl.when(tile_all_upper)
        def _full():
            accumulate(False)

        @pl.when((~tile_all_upper) & (~tile_all_lower))
        def _diag():
            accumulate(True)

        last = (i == pl.num_programs(0) - 1) & (j == pl.num_programs(1) - 1)

        @pl.when(last)
        def _finalize():
            # int32 counts are exact; fold the symmetry factor and the
            # diagonal ties in f32 only for the final ratio.  (All-equal y
            # gives 0/0 -> NaN, identical to the PyTorch reference.)
            s = strict_acc[...].astype(jnp.float32) * 2.0
            m = tie_acc[...].astype(jnp.float32) * 2.0 + jnp.float32(n)
            denom = jnp.float32(n * n) - m
            out_ref[...] = 1.0 - s / denom

    return kernel


def _round_up(x: int, m: int) -> int:
    return ((x + m - 1) // m) * m


@functools.partial(jax.jit, static_argnames=("size_average",))
def ranking_accuracy_loss(preds, y, size_average=True):
    # size_average is accepted but unused, matching the reference module.
    preds = preds.reshape(-1).astype(jnp.float32)
    y = y.reshape(-1).astype(jnp.float32)
    n = preds.shape[0]

    # Lane tile multiple of 128, sublane tile multiple of 8; capped at
    # 256 x 1024 so the handful of live (ts, tl) f32/i32 temporaries stay a
    # few MiB (fits v7x's smaller VMEM) while lanes stay dense and per-step
    # overhead is amortized.
    tl = min(1024, _round_up(n, 128))
    ts = min(256, _round_up(n, 8))
    nl = _round_up(n, tl)
    ns = _round_up(n, ts)

    # NaN-pad y so padded pairs fail >, <, == and contribute nothing.
    y_row = jnp.pad(y, (0, nl - n), constant_values=jnp.nan).reshape(1, nl)
    y_col = jnp.pad(y, (0, ns - n), constant_values=jnp.nan).reshape(ns, 1)
    p_row = jnp.pad(preds, (0, nl - n)).reshape(1, nl)
    p_col = jnp.pad(preds, (0, ns - n)).reshape(ns, 1)

    grid = (ns // ts, nl // tl)

    out = pl.pallas_call(
        _make_kernel(n, ts, tl),
        out_shape=jax.ShapeDtypeStruct((1, 1), jnp.float32),
        grid_spec=pltpu.PrefetchScalarGridSpec(
            num_scalar_prefetch=0,
            grid=grid,
            in_specs=[
                pl.BlockSpec((ts, 1), lambda i, j: (i, 0)),   # y column strip
                pl.BlockSpec((1, tl), lambda i, j: (0, j)),   # y row strip
                pl.BlockSpec((ts, 1), lambda i, j: (i, 0)),   # preds column strip
                pl.BlockSpec((1, tl), lambda i, j: (0, j)),   # preds row strip
            ],
            out_specs=pl.BlockSpec((1, 1), lambda i, j: (0, 0)),
            scratch_shapes=[
                pltpu.VMEM((1, 1), jnp.int32),   # strict-agreement count (upper tri)
                pltpu.VMEM((1, 1), jnp.int32),   # tie count (upper tri)
            ],
        ),
        compiler_params=pltpu.CompilerParams(
            # Both axes feed the shared scratch accumulators / output block.
            dimension_semantics=("arbitrary", "arbitrary"),
            vmem_limit_bytes=32 * 1024 * 1024,
        ),
    )(y_col, y_row, p_col, p_row)
    return out[0, 0]


def _reference_loss(preds, y):
    """Pure-JAX port of the PyTorch forward, for verification."""
    preds = preds.reshape(-1).astype(jnp.float32)
    y = y.reshape(-1).astype(jnp.float32)
    n = preds.shape[0]
    gt_cmp = jnp.sign(y[:, None] - y[None, :])
    pr_cmp = jnp.sign(preds[:, None] - preds[None, :])
    agree = ((gt_cmp == pr_cmp) | (gt_cmp == 0)).astype(jnp.float32)
    m = jnp.sum((gt_cmp == 0).astype(jnp.float32))
    acc = (jnp.sum(agree) - m) / (n * n - m)
    return 1.0 - acc


if __name__ == "__main__":
    key = jax.random.PRNGKey(0)

    # n=8: single masked tile; n=300: non-aligned multi-row-tile grid with NaN
    # padding; n=1500: exercises all three tile classes (skip / full / masked).
    for n in (8, 300, 1500):
        kp, ky, key = jax.random.split(key, 3)
        preds = jax.random.normal(kp, (n, 1), dtype=jnp.float32)
        y = jax.random.randint(ky, (n, 1), 0, 4).astype(jnp.float32)

        loss = jax.block_until_ready(ranking_accuracy_loss(preds, y))
        ref = _reference_loss(preds, y)
        assert jnp.allclose(loss, ref, atol=1e-6), (n, loss, ref)

    print("KERNEL_OK")
</pallas_src>

<mosaic_0001>
module attributes {stable_mosaic.version = 11 : i64} {
  func.func @kernel(%arg0: i32, %arg1: i32, %arg2: memref<8x1xf32, #tpu.memory_space<vmem>>, %arg3: memref<1x128xf32, #tpu.memory_space<vmem>>, %arg4: memref<8x1xf32, #tpu.memory_space<vmem>>, %arg5: memref<1x128xf32, #tpu.memory_space<vmem>>, %arg6: memref<1x1xf32, #tpu.memory_space<vmem>>, %arg7: memref<1x1xi32, #tpu.memory_space<vmem>>, %arg8: memref<1x1xi32, #tpu.memory_space<vmem>>) attributes {dimension_semantics = [#tpu.dimension_semantics<arbitrary>, #tpu.dimension_semantics<arbitrary>], iteration_bounds = array<i64: 1, 1>, scalar_prefetch = 0 : i64, scratch_operands = 2 : i64, tpu.core_type = #tpu.core_type<tc>, window_params = [{transform_indices = @transform_0, window_bounds = array<i64: 8, 1>}, {transform_indices = @transform_1, window_bounds = array<i64: 1, 128>}, {transform_indices = @transform_2, window_bounds = array<i64: 8, 1>}, {transform_indices = @transform_3, window_bounds = array<i64: 1, 128>}, {pipeline_mode = #tpu.pipeline_mode<synchronous>, transform_indices = @transform_4, window_bounds = array<i64: 1, 1>}]} {
    %c0_i32 = arith.constant 0 : i32
    %0 = arith.cmpi eq, %arg0, %c0_i32 : i32
    %c0_i32_0 = arith.constant 0 : i32
    %1 = arith.cmpi eq, %arg1, %c0_i32_0 : i32
    %2 = arith.andi %0, %1 : i1
    %3 = arith.extui %2 : i1 to i32
    %c0_i32_1 = arith.constant 0 : i32
    %4 = arith.cmpi ne, %3, %c0_i32_1 : i32
    scf.if %4 {
      %c0_i32_10 = arith.constant 0 : i32
      %23 = vector.broadcast %c0_i32_10 : i32 to vector<1x1xi32>
      %c0 = arith.constant 0 : index
      %c0_11 = arith.constant 0 : index
      %24 = vector.load %arg7[%c0, %c0_11] : memref<1x1xi32, #tpu.memory_space<vmem>>, vector<1x1xi32>
      tpu.vector_store %arg7[%c0, %c0_11], %23 {strides = array<i32>} : memref<1x1xi32, #tpu.memory_space<vmem>>, vector<1x1xi32>,
      %c0_i32_12 = arith.constant 0 : i32
      %25 = vector.broadcast %c0_i32_12 : i32 to vector<1x1xi32>
      %c0_13 = arith.constant 0 : index
      %c0_14 = arith.constant 0 : index
      %26 = vector.load %arg8[%c0_13, %c0_14] : memref<1x1xi32, #tpu.memory_space<vmem>>, vector<1x1xi32>
      tpu.vector_store %arg8[%c0_13, %c0_14], %25 {strides = array<i32>} : memref<1x1xi32, #tpu.memory_space<vmem>>, vector<1x1xi32>,
    } else {
    }
    %c8_i32 = arith.constant 8 : i32
    %5 = arith.muli %arg0, %c8_i32 : i32
    %c128_i32 = arith.constant 128 : i32
    %6 = arith.muli %arg1, %c128_i32 : i32
    %c8_i32_2 = arith.constant 8 : i32
    %7 = arith.addi %5, %c8_i32_2 : i32
    %8 = arith.cmpi sle, %7, %6 : i32
    %c128_i32_3 = arith.constant 128 : i32
    %9 = arith.addi %6, %c128_i32_3 : i32
    %10 = arith.cmpi sge, %5, %9 : i32
    %11 = arith.extui %8 : i1 to i32
    %c0_i32_4 = arith.constant 0 : i32
    %12 = arith.cmpi ne, %11, %c0_i32_4 : i32
    scf.if %12 {
      %c0 = arith.constant 0 : index
      %c0_10 = arith.constant 0 : index
      %23 = vector.load %arg2[%c0, %c0_10] : memref<8x1xf32, #tpu.memory_space<vmem>>, vector<8x1xf32>
      %c0_11 = arith.constant 0 : index
      %c0_12 = arith.constant 0 : index
      %24 = vector.load %arg3[%c0_11, %c0_12] : memref<1x128xf32, #tpu.memory_space<vmem>>, vector<1x128xf32>
      %25 = vector.broadcast %23 : vector<8x1xf32> to vector<8x128xf32>
      %26 = vector.broadcast %24 : vector<1x128xf32> to vector<8x128xf32>
      %27 = arith.subf %25, %26 : vector<8x128xf32>
      %c0_13 = arith.constant 0 : index
      %c0_14 = arith.constant 0 : index
      %28 = vector.load %arg4[%c0_13, %c0_14] : memref<8x1xf32, #tpu.memory_space<vmem>>, vector<8x1xf32>
      %c0_15 = arith.constant 0 : index
      %c0_16 = arith.constant 0 : index
      %29 = vector.load %arg5[%c0_15, %c0_16] : memref<1x128xf32, #tpu.memory_space<vmem>>, vector<1x128xf32>
      %30 = vector.broadcast %28 : vector<8x1xf32> to vector<8x128xf32>
      %31 = vector.broadcast %29 : vector<1x128xf32> to vector<8x128xf32>
      %32 = arith.subf %30, %31 : vector<8x128xf32>
      %cst = arith.constant 0.000000e+00 : f32
      %33 = vector.broadcast %cst : f32 to vector<8x128xf32>
      %34 = arith.cmpf ogt, %27, %33 : vector<8x128xf32>
      %cst_17 = arith.constant 0.000000e+00 : f32
      %35 = vector.broadcast %cst_17 : f32 to vector<8x128xf32>
      %36 = arith.cmpf ogt, %32, %35 : vector<8x128xf32>
      %37 = arith.andi %34, %36 : vector<8x128xi1>
      %cst_18 = arith.constant 0.000000e+00 : f32
      %38 = vector.broadcast %cst_18 : f32 to vector<8x128xf32>
      %39 = arith.cmpf olt, %27, %38 : vector<8x128xf32>
      %cst_19 = arith.constant 0.000000e+00 : f32
      %40 = vector.broadcast %cst_19 : f32 to vector<8x128xf32>
      %41 = arith.cmpf olt, %32, %40 : vector<8x128xf32>
      %42 = arith.andi %39, %41 : vector<8x128xi1>
      %43 = arith.ori %37, %42 : vector<8x128xi1>
      %cst_20 = arith.constant 0.000000e+00 : f32
      %44 = vector.broadcast %cst_20 : f32 to vector<8x128xf32>
      %45 = arith.cmpf oeq, %27, %44 : vector<8x128xf32>
      %c0_21 = arith.constant 0 : index
      %c0_22 = arith.constant 0 : index
      %46 = vector.load %arg7[%c0_21, %c0_22] : memref<1x1xi32, #tpu.memory_space<vmem>>, vector<1x1xi32>
      %47 = arith.extui %43 : vector<8x128xi1> to vector<8x128xi32>
      %48 = vector.shape_cast %47 : vector<8x128xi32> to vector<1x8x128xi32>
      %cst_23 = arith.constant dense<0> : vector<1xi32>
      %49 = vector.multi_reduction <add>, %48, %cst_23 [1, 2] : vector<1x8x128xi32> to vector<1xi32>
      %50 = vector.shape_cast %49 : vector<1xi32> to vector<1x1x1xi32>
      %51 = vector.extract %50[0, 0, 0] : i32 from vector<1x1x1xi32>
      %52 = vector.broadcast %51 : i32 to vector<1x1xi32>
      %53 = arith.addi %46, %52 : vector<1x1xi32>
      %c0_24 = arith.constant 0 : index
      %c0_25 = arith.constant 0 : index
      %54 = vector.load %arg7[%c0_24, %c0_25] : memref<1x1xi32, #tpu.memory_space<vmem>>, vector<1x1xi32>
      tpu.vector_store %arg7[%c0_24, %c0_25], %53 {strides = array<i32>} : memref<1x1xi32, #tpu.memory_space<vmem>>, vector<1x1xi32>,
      %c0_26 = arith.constant 0 : index
      %c0_27 = arith.constant 0 : index
      %55 = vector.load %arg8[%c0_26, %c0_27] : memref<1x1xi32, #tpu.memory_space<vmem>>, vector<1x1xi32>
      %56 = arith.extui %45 : vector<8x128xi1> to vector<8x128xi32>
      %57 = vector.shape_cast %56 : vector<8x128xi32> to vector<1x8x128xi32>
      %cst_28 = arith.constant dense<0> : vector<1xi32>
      %58 = vector.multi_reduction <add>, %57, %cst_28 [1, 2] : vector<1x8x128xi32> to vector<1xi32>
      %59 = vector.shape_cast %58 : vector<1xi32> to vector<1x1x1xi32>
      %60 = vector.extract %59[0, 0, 0] : i32 from vector<1x1x1xi32>
      %61 = vector.broadcast %60 : i32 to vector<1x1xi32>
      %62 = arith.addi %55, %61 : vector<1x1xi32>
      %c0_29 = arith.constant 0 : index
      %c0_30 = arith.constant 0 : index
      %63 = vector.load %arg8[%c0_29, %c0_30] : memref<1x1xi32, #tpu.memory_space<vmem>>, vector<1x1xi32>
      tpu.vector_store %arg8[%c0_29, %c0_30], %62 {strides = array<i32>} : memref<1x1xi32, #tpu.memory_space<vmem>>, vector<1x1xi32>,
    } else {
    }
    %true = arith.constant true
    %13 = arith.xori %8, %true : i1
    %true_5 = arith.constant true
    %14 = arith.xori %10, %true_5 : i1
    %15 = arith.andi %13, %14 : i1
    %16 = arith.extui %15 : i1 to i32
    %c0_i32_6 = arith.constant 0 : i32
    %17 = arith.cmpi ne, %16, %c0_i32_6 : i32
    scf.if %17 {
      %c0 = arith.constant 0 : index
      %c0_10 = arith.constant 0 : index
      %23 = vector.load %arg2[%c0, %c0_10] : memref<8x1xf32, #tpu.memory_space<vmem>>, vector<8x1xf32>
      %c0_11 = arith.constant 0 : index
      %c0_12 = arith.constant 0 : index
      %24 = vector.load %arg3[%c0_11, %c0_12] : memref<1x128xf32, #tpu.memory_space<vmem>>, vector<1x128xf32>
      %25 = vector.broadcast %23 : vector<8x1xf32> to vector<8x128xf32>
      %26 = vector.broadcast %24 : vector<1x128xf32> to vector<8x128xf32>
      %27 = arith.subf %25, %26 : vector<8x128xf32>
      %c0_13 = arith.constant 0 : index
      %c0_14 = arith.constant 0 : index
      %28 = vector.load %arg4[%c0_13, %c0_14] : memref<8x1xf32, #tpu.memory_space<vmem>>, vector<8x1xf32>
      %c0_15 = arith.constant 0 : index
      %c0_16 = arith.constant 0 : index
      %29 = vector.load %arg5[%c0_15, %c0_16] : memref<1x128xf32, #tpu.memory_space<vmem>>, vector<1x128xf32>
      %30 = vector.broadcast %28 : vector<8x1xf32> to vector<8x128xf32>
      %31 = vector.broadcast %29 : vector<1x128xf32> to vector<8x128xf32>
      %32 = arith.subf %30, %31 : vector<8x128xf32>
      %cst = arith.constant 0.000000e+00 : f32
      %33 = vector.broadcast %cst : f32 to vector<8x128xf32>
      %34 = arith.cmpf ogt, %27, %33 : vector<8x128xf32>
      %cst_17 = arith.constant 0.000000e+00 : f32
      %35 = vector.broadcast %cst_17 : f32 to vector<8x128xf32>
      %36 = arith.cmpf ogt, %32, %35 : vector<8x128xf32>
      %37 = arith.andi %34, %36 : vector<8x128xi1>
      %cst_18 = arith.constant 0.000000e+00 : f32
      %38 = vector.broadcast %cst_18 : f32 to vector<8x128xf32>
      %39 = arith.cmpf olt, %27, %38 : vector<8x128xf32>
      %cst_19 = arith.constant 0.000000e+00 : f32
      %40 = vector.broadcast %cst_19 : f32 to vector<8x128xf32>
      %41 = arith.cmpf olt, %32, %40 : vector<8x128xf32>
      %42 = arith.andi %39, %41 : vector<8x128xi1>
      %43 = arith.ori %37, %42 : vector<8x128xi1>
      %cst_20 = arith.constant 0.000000e+00 : f32
      %44 = vector.broadcast %cst_20 : f32 to vector<8x128xf32>
      %45 = arith.cmpf oeq, %27, %44 : vector<8x128xf32>
      %46 = tpu.iota {dimensions = array<i32: 0>} : vector<8x128xi32>
      %47 = vector.broadcast %5 : i32 to vector<8x128xi32>
      %48 = arith.addi %47, %46 : vector<8x128xi32>
      %49 = tpu.iota {dimensions = array<i32: 1>} : vector<8x128xi32>
      %50 = vector.broadcast %6 : i32 to vector<8x128xi32>
      %51 = arith.addi %50, %49 : vector<8x128xi32>
      %52 = arith.cmpi slt, %48, %51 : vector<8x128xi32>
      %53 = arith.andi %43, %52 : vector<8x128xi1>
      %54 = arith.andi %45, %52 : vector<8x128xi1>
      %c0_21 = arith.constant 0 : index
      %c0_22 = arith.constant 0 : index
      %55 = vector.load %arg7[%c0_21, %c0_22] : memref<1x1xi32, #tpu.memory_space<vmem>>, vector<1x1xi32>
      %56 = arith.extui %53 : vector<8x128xi1> to vector<8x128xi32>
      %57 = vector.shape_cast %56 : vector<8x128xi32> to vector<1x8x128xi32>
      %cst_23 = arith.constant dense<0> : vector<1xi32>
      %58 = vector.multi_reduction <add>, %57, %cst_23 [1, 2] : vector<1x8x128xi32> to vector<1xi32>
      %59 = vector.shape_cast %58 : vector<1xi32> to vector<1x1x1xi32>
      %60 = vector.extract %59[0, 0, 0] : i32 from vector<1x1x1xi32>
      %61 = vector.broadcast %60 : i32 to vector<1x1xi32>
      %62 = arith.addi %55, %61 : vector<1x1xi32>
      %c0_24 = arith.constant 0 : index
      %c0_25 = arith.constant 0 : index
      %63 = vector.load %arg7[%c0_24, %c0_25] : memref<1x1xi32, #tpu.memory_space<vmem>>, vector<1x1xi32>
      tpu.vector_store %arg7[%c0_24, %c0_25], %62 {strides = array<i32>} : memref<1x1xi32, #tpu.memory_space<vmem>>, vector<1x1xi32>,
      %c0_26 = arith.constant 0 : index
      %c0_27 = arith.constant 0 : index
      %64 = vector.load %arg8[%c0_26, %c0_27] : memref<1x1xi32, #tpu.memory_space<vmem>>, vector<1x1xi32>
      %65 = arith.extui %54 : vector<8x128xi1> to vector<8x128xi32>
      %66 = vector.shape_cast %65 : vector<8x128xi32> to vector<1x8x128xi32>
      %cst_28 = arith.constant dense<0> : vector<1xi32>
      %67 = vector.multi_reduction <add>, %66, %cst_28 [1, 2] : vector<1x8x128xi32> to vector<1xi32>
      %68 = vector.shape_cast %67 : vector<1xi32> to vector<1x1x1xi32>
      %69 = vector.extract %68[0, 0, 0] : i32 from vector<1x1x1xi32>
      %70 = vector.broadcast %69 : i32 to vector<1x1xi32>
      %71 = arith.addi %64, %70 : vector<1x1xi32>
      %c0_29 = arith.constant 0 : index
      %c0_30 = arith.constant 0 : index
      %72 = vector.load %arg8[%c0_29, %c0_30] : memref<1x1xi32, #tpu.memory_space<vmem>>, vector<1x1xi32>
      tpu.vector_store %arg8[%c0_29, %c0_30], %71 {strides = array<i32>} : memref<1x1xi32, #tpu.memory_space<vmem>>, vector<1x1xi32>,
    } else {
    }
    %c0_i32_7 = arith.constant 0 : i32
    %18 = arith.cmpi eq, %arg0, %c0_i32_7 : i32
    %c0_i32_8 = arith.constant 0 : i32
    %19 = arith.cmpi eq, %arg1, %c0_i32_8 : i32
    %20 = arith.andi %18, %19 : i1
    %21 = arith.extui %20 : i1 to i32
    %c0_i32_9 = arith.constant 0 : i32
    %22 = arith.cmpi ne, %21, %c0_i32_9 : i32
    scf.if %22 {
      %c0 = arith.constant 0 : index
      %c0_10 = arith.constant 0 : index
      %23 = vector.load %arg7[%c0, %c0_10] : memref<1x1xi32, #tpu.memory_space<vmem>>, vector<1x1xi32>
      %24 = arith.sitofp %23 : vector<1x1xi32> to vector<1x1xf32>
      %cst = arith.constant 2.000000e+00 : f32
      %25 = vector.broadcast %cst : f32 to vector<1x1xf32>
      %26 = arith.mulf %24, %25 : vector<1x1xf32>
      %c0_11 = arith.constant 0 : index
      %c0_12 = arith.constant 0 : index
      %27 = vector.load %arg8[%c0_11, %c0_12] : memref<1x1xi32, #tpu.memory_space<vmem>>, vector<1x1xi32>
      %28 = arith.sitofp %27 : vector<1x1xi32> to vector<1x1xf32>
      %cst_13 = arith.constant 2.000000e+00 : f32
      %29 = vector.broadcast %cst_13 : f32 to vector<1x1xf32>
      %30 = arith.mulf %28, %29 : vector<1x1xf32>
      %cst_14 = arith.constant 8.000000e+00 : f32
      %31 = vector.broadcast %cst_14 : f32 to vector<1x1xf32>
      %32 = arith.addf %30, %31 : vector<1x1xf32>
      %cst_15 = arith.constant 6.400000e+01 : f32
      %33 = vector.broadcast %cst_15 : f32 to vector<1x1xf32>
      %34 = arith.subf %33, %32 : vector<1x1xf32>
      %35 = arith.divf %26, %34 : vector<1x1xf32>
      %cst_16 = arith.constant 1.000000e+00 : f32
      %36 = vector.broadcast %cst_16 : f32 to vector<1x1xf32>
      %37 = arith.subf %36, %35 : vector<1x1xf32>
      %c0_17 = arith.constant 0 : index
      %c0_18 = arith.constant 0 : index
      %38 = vector.load %arg6[%c0_17, %c0_18] : memref<1x1xf32, #tpu.memory_space<vmem>>, vector<1x1xf32>
      tpu.vector_store %arg6[%c0_17, %c0_18], %37 {strides = array<i32>} : memref<1x1xf32, #tpu.memory_space<vmem>>, vector<1x1xf32>,
    } else {
    }
    return
  }
  func.func @transform_0(%arg0: i32, %arg1: i32) -> (i32, i32) {
    %c0_i32 = arith.constant 0 : i32
    %c0_i32_0 = arith.constant 0 : i32
    return %arg0, %c0_i32 : i32, i32
  }
  func.func @transform_1(%arg0: i32, %arg1: i32) -> (i32, i32) {
    %c0_i32 = arith.constant 0 : i32
    %c0_i32_0 = arith.constant 0 : i32
    return %c0_i32, %arg1 : i32, i32
  }
  func.func @transform_2(%arg0: i32, %arg1: i32) -> (i32, i32) {
    %c0_i32 = arith.constant 0 : i32
    %c0_i32_0 = arith.constant 0 : i32
    return %arg0, %c0_i32 : i32, i32
  }
  func.func @transform_3(%arg0: i32, %arg1: i32) -> (i32, i32) {
    %c0_i32 = arith.constant 0 : i32
    %c0_i32_0 = arith.constant 0 : i32
    return %c0_i32, %arg1 : i32, i32
  }
  func.func @transform_4(%arg0: i32, %arg1: i32) -> (i32, i32) {
    %c0_i32 = arith.constant 0 : i32
    %c0_i32_0 = arith.constant 0 : i32
    %c0_i32_1 = arith.constant 0 : i32
    return %c0_i32, %c0_i32_0 : i32, i32
  }
}

</mosaic_0001>

<bundles_post_ra>
// kernel: ranking_accuracy_loss.1
= control target key start
LH: loop header
LB: loop body
LE: loop exit
PB: predicated region body
PF: predicated region fallthrough
CT: control target
= control target key end

     0   :  { %v288_v1 = vmov 0   ;;  %s346_s0 = inlined_call_operand.vmem [shape: f32[8,1], index: 0, kind: input, shape index: {}]   ;;  %s347_s1 = inlined_call_operand.vmem [shape: f32[1,128], index: 1, kind: input, shape index: {}]   ;;  %s348_s2 = inlined_call_operand.vmem [shape: f32[8,1], index: 2, kind: input, shape index: {}]   ;;  %s349_s3 = inlined_call_operand.vmem [shape: f32[1,128], index: 3, kind: input, shape index: {}]   ;;  %s350_s4 = inlined_call_operand.hbm [shape: f32[1,1], index: 4, kind: output, shape index: {}]  }
   0x1   :  { %v126_v0 = vld [vmem:[%s346_s0] sm:$0xff]  ;;  %261 = vset.pattern.permute.xlu0 %v288_v1 }
   0x2   :  { %9 = vsyncpa [#allocation5], 0  ;;  %130 = vperm.xlu0 %261, %v126_v0   ;;  %v140_v2 = vld [vmem:[%s348_s2] sm:$0xff]  ;;  %v162_v3 = vlaneseq  ;;  %vm24_vm11 = vcmask 0  }
   0x3   :  { %v253_v6 = vld [vmem:[%s347_s1] ss:$0 sm:$0xff]  ;;  %25 = vst.msk [vmem:[#allocation2] sm:$0x1] %vm24_vm11, %v288_v1  ;;  %26 = vst.msk [vmem:[#allocation3] sm:$0x1] %vm24_vm11, %v288_v1 }
   0x4   :  { %v163_v4 = vshrl.u32 %v162_v3, 7  ;;  %v167_v5 = vand.u32 127, %v162_v3  ;;  %v254_v9 = vld [vmem:[%s349_s3] ss:$0 sm:$0xff]  ;;  %s289_s3 = smov [#allocation4]  }
   0x5   :  { %s243_s22 = sshll.u32 %s289_s3, 4  ;;  %s244_s22 = int_to_ptr.vmem [resolvable:$true] %s243_s22 }
   0x6   :  { %144 = vperm.xlu0 %261, %v140_v2   ;;  %vm170_vm0 = vcmp.lt.s32.totalorder %v163_v4, %v167_v5  ;;  %s264_s23 = scalar_lea.vmem %s244_s22, 16  ;;  %s268_s24 = scalar_lea.vmem %s244_s22, 32 }
   0x7   :  { %p265_p0 = scmp.ne.s32.totalorder %s244_s22, %s264_s23  ;;  %p269_p1 = scmp.lt.s32.totalorder %s244_s22, %s244_s22 }
   0x8   :  { %p270_p2 = scmp.lt.s32.totalorder %s268_s24, %s264_s23 }
   0xa   :  { %v173_v46 = vld [vmem:[#allocation2] sm:$0x1]  ;;  %v198_v48 = vld [vmem:[#allocation3] sm:$0x1]  ;;  %p271_p3 = por %p270_p2, %p269_p1 }
   0xc   :  { %p272_p4 = pnand %p271_p3, %p265_p0 }
  0x81   :  { %v131_v7 = vpop.permute.xlu0 %130 }
  0x82   :  { %v139_v8 = vsub.f32 %v131_v7, %v253_v6 }
  0x84   :  { %vm161_vm1 = vcmp.eq.f32.partialorder %v139_v8, 0.0  ;;  %vm154_vm3 = vcmp.gt.f32.partialorder %v139_v8, 0.0  ;;  %vm157_vm6 = vcmp.lt.f32.partialorder %v139_v8, 0.0 }
  0x85   :  { %v145_v10 = vpop.permute.xlu0 %144  ;;  %vm172_vm2 = vmand %vm161_vm1, %vm170_vm0 }
  0x86   :  { %v153_v11 = vsub.f32 %v145_v10, %v254_v9  ;;  %v199_v12 = vsel %vm172_vm2, 1, %v288_v1 }
  0x87   :  { %v201_v13 = vshrl.u32 %v199_v12, 16  ;;  %v200_v20 = vand.u32 65535, %v199_v12 }
  0x88   :  { %vm155_vm4 = vcmp.gt.f32.partialorder %v153_v11, 0.0  ;;  %vm158_vm5 = vcmp.lt.f32.partialorder %v153_v11, 0.0 }
  0x89   :  { %vm156_vm7 = vmand %vm154_vm3, %vm155_vm4  ;;  %v203_v14 = vcvt.s32.f32 %v201_v13  ;;  %v202_v21 = vcvt.s32.f32 %v200_v20 }
  0x8a   :  { %vm159_vm8 = vmand %vm157_vm6, %vm158_vm5 }
  0x8b   :  { %vm160_vm9 = vmor %vm156_vm7, %vm159_vm8  ;;  %206 = vadd.xlane.f32.xlu1 %v203_v14 }
  0x8c   :  { %vm171_vm10 = vmand %vm160_vm9, %vm170_vm0 }
  0x8d   :  { %v174_v15 = vsel %vm171_vm10, 1, %v288_v1 }
  0x8e   :  { %v176_v16 = vshrl.u32 %v174_v15, 16  ;;  %v175_v17 = vand.u32 65535, %v174_v15 }
  0x90   :  { %v178_v18 = vcvt.s32.f32 %v176_v16  ;;  %v177_v19 = vcvt.s32.f32 %v175_v17 }
  0x92   :  { %181 = vadd.xlane.f32.xlu1 %v178_v18  ;;  %179 = vadd.xlane.f32.xlu0 %v177_v19 }
  0x96   :  { %204 = vadd.xlane.f32.xlu1 %v202_v21 }
 0x118   :  { %v207_v22 = vpop.xlane.xlu1 %206 }
 0x119   :  { %v209_v25 = vcvt.f32.s32 %v207_v22 }
 0x11b   :  { %v210_v30 = vshll.u32 %v209_v25, 16 }
 0x11f   :  { %v182_v23 = vpop.xlane.xlu1 %181  ;;  %v180_v24 = vpop.xlane.xlu0 %179 }
 0x120   :  { %v184_v26 = vcvt.f32.s32 %v182_v23  ;;  %v183_v28 = vcvt.f32.s32 %v180_v24 }
 0x122   :  { %v185_v27 = vshll.u32 %v184_v26, 16 }
 0x123   :  { %v205_v29 = vpop.xlane.xlu1 %204 }
 0x124   :  { %v186_v31 = vadd.s32 %v185_v27, %v183_v28  ;;  %v208_v32 = vcvt.f32.s32 %v205_v29 }
 0x126   :  { %v187_v33 = vrot.slane %v186_v31, 4  ;;  %v211_v34 = vadd.s32 %v210_v30, %v208_v32 }
 0x128   :  { %v188_v35 = vadd.s32 %v187_v33, %v186_v31  ;;  %v212_v36 = vrot.slane %v211_v34, 4 }
 0x12a   :  { %v213_v37 = vadd.s32 %v212_v36, %v211_v34  ;;  %v189_v38 = vrot.slane %v188_v35, 2 }
 0x12c   :  { %v190_v39 = vadd.s32 %v189_v38, %v188_v35  ;;  %v214_v40 = vrot.slane %v213_v37, 2 }
 0x12e   :  { %v191_v41 = vrot.slane %v190_v39, 1  ;;  %v215_v42 = vadd.s32 %v214_v40, %v213_v37 }
 0x130   :  { %v192_v43 = vadd.s32 %v191_v41, %v190_v39  ;;  %v216_v44 = vrot.slane %v215_v42, 1 }
 0x132   :  { %255 = vpush %v192_v43  ;;  %v217_v45 = vadd.s32 %v216_v44, %v215_v42 }
 0x134   :  { %257 = vpush %v217_v45 }
 0x163   :  { %s256_s1 = spop %255 }
 0x164   :  { %v194_v47 = vstv %s256_s1 }
 0x165   :  { %v195_v49 = vadd.s32 %v194_v47, %v173_v46  ;;  %s258_s2 = spop %257 }
 0x166   :  { %v219_v50 = vstv %s258_s2 }
 0x167   :  { %197 = vst.msk [vmem:[#allocation2] sm:$0x1] %vm24_vm11, %v195_v49  ;;  %v220_v51 = vadd.s32 %v219_v50, %v198_v48 }
 0x169   :  { %221 = vst.msk [vmem:[#allocation3] sm:$0x1] %vm24_vm11, %v220_v51 }
 0x16e   :  { %v224_v57 = vld [vmem:[#allocation2] sm:$0x1] }
 0x16f   :  { %v225_v58 = vcvt.s32.f32 %v224_v57 }
 0x170   :  { %v227_v52 = vld [vmem:[#allocation3] sm:$0x1] }
 0x171   :  { %v228_v53 = vcvt.s32.f32 %v227_v52  ;;  %v226_v59 = vmul.f32 2.0, %v225_v58 }
 0x173   :  { %v229_v54 = vmul.f32 2.0, %v228_v53 }
 0x175   :  { %v230_v55 = vadd.f32 8.0, %v229_v54 }
 0x177   :  { %v231_v56 = vsub.f32 64.0, %v230_v55 }
 0x179   :  { %262 = vrcp.f32 %v231_v56 }
 0x183   :  { %v263_v60 = vpop.eup %262 }
 0x184   :  { %v233_v61 = vmul.f32 %v263_v60, %v226_v59 }
 0x186   :  { %v234_v62 = vsub.f32 1.0, %v233_v61 }
 0x188   :  { %236 = vst.msk [vmem:[#allocation4] sm:$0x1] %vm24_vm11, %v234_v62 }
 0x189   :  { %275 = shalt.err (!%p272_p4)
}
 0x18a   :  { %s276_s27 = scalar_lea.hbm %s350_s4, 16 }
 0x18b   :  { %p277_p5 = scmp.ne.s32.totalorder %s350_s4, %s276_s27  ;;  %p280_p6 = scmp.lt.u32.totalorder %s276_s27, %s350_s4 }
 0x18d   :  { %p282_p7 = pnand %p280_p6, %p277_p5 }
 0x18f   :  { %285 = shalt.err (!%p282_p7)
}
 0x190   :  { %246 = dma.vmem_to_hbm [thread:$0]  %s244_s22, 16, %s350_s4, [#allocation5]  }
 0x191   :  { %286 = dma.done.wait [#allocation5], 16  }
 0x192   :  { %287 = vsyncadd [#allocation5], 4294967280 }
 0x193   :  { %250 = vsyncpa [#allocation5], 1 }

</bundles_post_ra>
